<compile_context>
chip_gen: v7x
topology: tpu7x:2x2x1
jax: 0.10.0
libtpu: 0.0.40
codegen_flags: <defaults>
</compile_context>

<pallas_src>
import numpy as np

import jax
import jax.numpy as jnp
from jax.experimental import pallas as pl
from jax.experimental.pallas import tpu as pltpu


def _round_up(x, m):
    return ((x + m - 1) // m) * m


def _vmem_capacity_bytes():
    try:
        info = pltpu.get_tpu_info()
        for attr in ("vmem_capacity_bytes", "vmem_bytes", "vmem_size_bytes"):
            v = getattr(info, attr, None)
            if v:
                return int(v)
    except Exception:
        pass
    return 64 << 20     # conservative default: v7x per-TC VMEM


def _compgcn_msg_proj_kernel(nnz_ref, blk_ref, a_f_ref, a_r_ref, invdeg_ref,
                             self_ref, ne_ref, w_ref, h_ref, stats_ref,
                             accf_ref, accr_ref):
    """grid = (node-row tiles, scheduled nonzero K blocks).

    Accumulates both direction TransE aggregates over the scheduled K blocks,
    then (at the last K step) applies the mean normalization, the fused 3-way
    projection, and emits BN partial statistics for this row tile.
    """
    i = pl.program_id(0)
    k = pl.program_id(1)

    @pl.when(k == 0)
    def _init():
        accf_ref[...] = jnp.zeros_like(accf_ref)
        accr_ref[...] = jnp.zeros_like(accr_ref)

    # Block-sparse skip: only the first nnz[i] scheduled blocks are real work;
    # the rest re-target the previous block (no new DMA) and are skipped here.
    @pl.when(k < nnz_ref[i])
    def _accumulate():
        ne = ne_ref[...]                                     # (kblk, Dp) bf16
        # int8 -> bf16 via i32/f32 (exact small integers); MXU stays on bf16.
        a_f = a_f_ref[...].astype(jnp.int32).astype(jnp.float32).astype(ne.dtype)
        a_r = a_r_ref[...].astype(jnp.int32).astype(jnp.float32).astype(ne.dtype)
        accf_ref[...] += jnp.dot(a_f, ne, preferred_element_type=jnp.float32)
        accr_ref[...] += jnp.dot(a_r, ne, preferred_element_type=jnp.float32)

    @pl.when(k == pl.num_programs(1) - 1)
    def _finalize():
        cdt = ne_ref.dtype
        dp = accf_ref.shape[1]
        agg_f = (invdeg_ref[:, 0:1] * accf_ref[...]).astype(cdt)   # fwd mean
        agg_r = (invdeg_ref[:, 1:2] * accr_ref[...]).astype(cdt)   # rev mean
        # Fused projection against static slices of the stacked weight.
        # (Biases and the 1/3 scale are cancelled by the train-mode BatchNorm.)
        h = jnp.dot(agg_f, w_ref[0:dp, :], preferred_element_type=jnp.float32)
        h = h + jnp.dot(agg_r, w_ref[dp:2 * dp, :],
                        preferred_element_type=jnp.float32)
        h = h + jnp.dot(self_ref[...], w_ref[2 * dp:3 * dp, :],
                        preferred_element_type=jnp.float32)
        h_ref[...] = h.astype(h_ref.dtype)                   # bf16 writeback
        s1 = jnp.sum(h, axis=0, keepdims=True)               # stats from f32 h
        s2 = jnp.sum(h * h, axis=0, keepdims=True)
        stats_ref[...] = jnp.concatenate([s1, s2], axis=0)[None]


def _bn_apply_kernel(h_ref, scsh_ref, out_ref):
    """Per row tile: out = h * scale + shift (scale/shift precomputed)."""
    out_ref[...] = (h_ref[...].astype(jnp.float32) * scsh_ref[0:1, :]
                    + scsh_ref[1:2, :])


def compgcn_forward(node_embs, edge_embs, src, dst, params, *,
                    tile_n=256, kblk=1024, compute_dtype=jnp.bfloat16):
    """CompGCN layer forward (TransE composition, mean aggregation, BatchNorm).

    params: Wt_O/Wt_I/Wt_S pre-transposed (in_dim, out_dim) weights, b_* biases
    (cancelled by training-mode BN), gamma/beta BatchNorm affine parameters.
    src/dst must be concrete (the block-sparse schedule is built host-side).
    """
    f32 = jnp.float32
    N, Din = node_embs.shape
    E = edge_embs.shape[0]
    Dout = params["Wt_O"].shape[1]

    Dp = _round_up(Din, 128)          # lane-dense feature dims
    Dop = _round_up(Dout, 128)

    # --- tile sizes (int8 adjacency: rows mult-of-32, K blocks mult-of-128);
    #     shrink until the accurately-modeled VMEM footprint fits the chip ---
    tile_n = _round_up(max(32, min(int(tile_n), 512)), 32)
    kblk = _round_up(max(128, min(int(kblk), 4096)), 128)

    def footprint(tn, kb):
        streamed = 2 * (2 * tn * kb * 1       # A_fwd, A_rev (int8), double-buffered
                        + kb * Dp * 2         # NE block (bf16)
                        + tn * Dp * 2         # self tile (bf16)
                        + tn * 2 * 4)         # 1/deg (f32)
        resident = 2 * (3 * Dp * Dop * 2)     # stacked W (bf16)
        outs = 2 * (tn * Dop * 2 + 2 * Dop * 4)
        scratch = 2 * tn * Dp * 4             # two f32 accumulators
        return streamed + resident + outs + scratch

    vmem_cap = _vmem_capacity_bytes()
    budget = int(0.80 * vmem_cap)
    while footprint(tile_n, kblk) > budget and (kblk > 128 or tile_n > 32):
        if kblk > 128:
            kblk = _round_up(max(128, kblk // 2), 128)
        else:
            tile_n = _round_up(max(32, tile_n // 2), 32)
    vmem_limit = int(min(max(footprint(tile_n, kblk) + (4 << 20), 16 << 20),
                         int(0.9 * vmem_cap)))

    Np = _round_up(N, tile_n)
    T = Np // tile_n
    Kp = _round_up(Np + E, kblk)      # fused K axis: node cols then edge cols
    Ep = Kp - Np
    KTb = Kp // kblk

    # --- host-side graph prep: fused count/scatter adjacency + sparsity schedule ---
    src_np = np.asarray(jax.device_get(src)).astype(np.int64)
    dst_np = np.asarray(jax.device_get(dst)).astype(np.int64)
    e_col = Np + np.arange(E, dtype=np.int64)

    a_f = np.zeros((Np, Kp), np.int32)   # [i,j<Np]=#edges j->i ; [i,Np+e]=-1 if dst[e]==i
    a_r = np.zeros((Np, Kp), np.int32)   # [i,j<Np]=#edges i->j ; [i,Np+e]=-1 if src[e]==i
    np.add.at(a_f, (dst_np, src_np), 1)
    np.add.at(a_f, (dst_np, e_col), -1)
    np.add.at(a_r, (src_np, dst_np), 1)
    np.add.at(a_r, (src_np, e_col), -1)
    assert int(np.abs(a_f).max()) <= 127 and int(np.abs(a_r).max()) <= 127, \
        "int8 adjacency requires per-pair edge multiplicity <= 127"

    in_deg = np.bincount(dst_np, minlength=Np).astype(np.float32)[:Np]
    out_deg = np.bincount(src_np, minlength=Np).astype(np.float32)[:Np]
    inv_deg = np.stack([1.0 / np.maximum(in_deg, 1.0),
                        1.0 / np.maximum(out_deg, 1.0)], axis=1)      # (Np, 2)

    nzmask = ((np.abs(a_f) + np.abs(a_r)) > 0).reshape(
        T, tile_n, KTb, kblk).any(axis=(1, 3))                        # (T, KTb)
    nnz = nzmask.sum(axis=1).astype(np.int32)                         # (T,)
    KT = max(1, int(nnz.max()))          # grid extent of the scheduled K axis
    blk_ids = np.zeros((T, KT), np.int32)
    for ti in range(T):
        ids = np.nonzero(nzmask[ti])[0].astype(np.int32)
        if ids.size:
            blk_ids[ti, :ids.size] = ids
            blk_ids[ti, ids.size:] = ids[-1]   # clamp -> no extra DMA on padded steps
    blk_flat = blk_ids.reshape(-1)

    # --- pad features to lane-dense shapes; cast matmul operands ---
    def pad2(x, rows, cols):
        r, c = x.shape
        return jnp.pad(x.astype(f32), ((0, rows - r), (0, cols - c)))

    nodes_p = pad2(node_embs, Np, Dp).astype(compute_dtype)           # (Np, Dp)
    edges_p = pad2(edge_embs, Ep, Dp).astype(compute_dtype)           # (Ep, Dp)
    ne = jnp.concatenate([nodes_p, edges_p], axis=0)                  # (Kp, Dp)
    w_stack = jnp.concatenate([pad2(params["Wt_O"], Dp, Dop),
                               pad2(params["Wt_I"], Dp, Dop),
                               pad2(params["Wt_S"], Dp, Dop)],
                              axis=0).astype(compute_dtype)           # (3*Dp, Dop)

    a_f = jnp.asarray(a_f.astype(np.int8))
    a_r = jnp.asarray(a_r.astype(np.int8))
    inv_deg = jnp.asarray(inv_deg)
    nnz_j = jnp.asarray(nnz)
    blk_j = jnp.asarray(blk_flat)

    n_nz = int(nzmask.sum())
    flops1 = n_nz * 2 * (2 * tile_n * kblk * Dp) + T * 3 * (2 * tile_n * Dp * Dop)
    bytes1 = (n_nz * (2 * tile_n * kblk + kblk * Dp * 2)
              + T * (tile_n * Dp * 2 + tile_n * 2 * 4 + tile_n * Dop * 2 + 2 * Dop * 4)
              + 3 * Dp * Dop * 2)

    grid_spec = pltpu.PrefetchScalarGridSpec(
        num_scalar_prefetch=2,
        grid=(T, KT),
        in_specs=[
            pl.BlockSpec((tile_n, kblk),
                         lambda i, k, nz_r, blk_r: (i, blk_r[i * KT + k])),   # A_fwd
            pl.BlockSpec((tile_n, kblk),
                         lambda i, k, nz_r, blk_r: (i, blk_r[i * KT + k])),   # A_rev
            pl.BlockSpec((tile_n, 2),
                         lambda i, k, nz_r, blk_r: (i, 0)),                   # 1/deg
            pl.BlockSpec((tile_n, Dp),
                         lambda i, k, nz_r, blk_r: (i, 0)),                   # self tile
            pl.BlockSpec((kblk, Dp),
                         lambda i, k, nz_r, blk_r: (blk_r[i * KT + k], 0)),   # NE block
            pl.BlockSpec((3 * Dp, Dop),
                         lambda i, k, nz_r, blk_r: (0, 0)),                   # stacked W
        ],
        out_specs=[
            pl.BlockSpec((tile_n, Dop), lambda i, k, nz_r, blk_r: (i, 0)),    # h tile
            pl.BlockSpec((1, 2, Dop), lambda i, k, nz_r, blk_r: (i, 0, 0)),   # BN partials
        ],
        scratch_shapes=[pltpu.VMEM((tile_n, Dp), jnp.float32),
                        pltpu.VMEM((tile_n, Dp), jnp.float32)],
    )

    h_bf, stats = pl.pallas_call(
        _compgcn_msg_proj_kernel,
        out_shape=(jax.ShapeDtypeStruct((Np, Dop), compute_dtype),
                   jax.ShapeDtypeStruct((T, 2, Dop), f32)),
        grid_spec=grid_spec,
        compiler_params=pltpu.CompilerParams(
            dimension_semantics=("parallel", "arbitrary"),
            vmem_limit_bytes=vmem_limit),
        cost_estimate=pl.CostEstimate(flops=int(flops1), transcendentals=0,
                                      bytes_accessed=int(bytes1)),
    )(nnz_j, blk_j, a_f, a_r, inv_deg, nodes_p, ne, w_stack)

    # --- BN: hoisted tiny reduction -> per-feature scale/shift (train-mode stats) ---
    totals = jnp.sum(stats, axis=0)                   # (2, Dop) f32
    mean = totals[0] / float(N)
    var = totals[1] / float(N) - mean * mean          # biased variance
    gamma = jnp.pad(params["gamma"].astype(f32), (0, Dop - Dout), constant_values=1.0)
    beta = jnp.pad(params["beta"].astype(f32), (0, Dop - Dout))
    scale = gamma * jax.lax.rsqrt(var + 1e-5)
    shift = beta - mean * scale
    scsh = jnp.stack([scale, shift], axis=0)          # (2, Dop)

    out_pad = pl.pallas_call(
        _bn_apply_kernel,
        out_shape=jax.ShapeDtypeStruct((Np, Dop), f32),
        grid=(T,),
        in_specs=[pl.BlockSpec((tile_n, Dop), lambda i: (i, 0)),
                  pl.BlockSpec((2, Dop), lambda i: (0, 0))],
        out_specs=pl.BlockSpec((tile_n, Dop), lambda i: (i, 0)),
        compiler_params=pltpu.CompilerParams(
            dimension_semantics=("parallel",),
            vmem_limit_bytes=vmem_limit),
        cost_estimate=pl.CostEstimate(flops=int(2 * Np * Dop), transcendentals=0,
                                      bytes_accessed=int(Np * Dop * 6 + 2 * Dop * 4)),
    )(h_bf, scsh)

    return out_pad[:N, :Dout]


def _reference(node_embs, edge_embs, src, dst, params):
    """Faithful f32 reference of the PyTorch module (eval dropout, train-mode BN)."""
    N = node_embs.shape[0]
    msg_fwd = node_embs[src] - edge_embs
    msg_rev = node_embs[dst] - edge_embs
    deg_in = jnp.zeros((N,)).at[dst].add(1.0)
    deg_out = jnp.zeros((N,)).at[src].add(1.0)
    agg_fwd = jnp.zeros_like(node_embs).at[dst].add(msg_fwd) / jnp.maximum(deg_in, 1.0)[:, None]
    agg_rev = jnp.zeros_like(node_embs).at[src].add(msg_rev) / jnp.maximum(deg_out, 1.0)[:, None]
    ho = agg_fwd @ params["Wt_O"] + params["b_O"]
    hi = agg_rev @ params["Wt_I"] + params["b_I"]
    hs = node_embs @ params["Wt_S"] + params["b_S"]
    h = (ho + hi + hs) / 3.0
    mean = h.mean(axis=0, keepdims=True)
    var = ((h - mean) ** 2).mean(axis=0, keepdims=True)
    return (h - mean) / jnp.sqrt(var + 1e-5) * params["gamma"] + params["beta"]


if __name__ == "__main__":
    key = jax.random.PRNGKey(0)
    N, E, Din, Dout = 96, 160, 32, 32

    k = jax.random.split(key, 12)
    node_embs = jax.random.normal(k[0], (N, Din), dtype=jnp.float32)
    edge_embs = jax.random.normal(k[1], (E, Din), dtype=jnp.float32)

    # Edges only among the first 64 nodes (no self-loops): the last node
    # row-tile has zero degree in both directions, which exercises the
    # block-sparse skip / empty-schedule path.
    src = jax.random.randint(k[2], (E,), 0, 64)
    offset = jax.random.randint(k[3], (E,), 1, 64)
    dst = (src + offset) % 64

    scale = 1.0 / jnp.sqrt(Din)
    params = {
        "Wt_O": jax.random.uniform(k[4], (Din, Dout), minval=-scale, maxval=scale),
        "b_O":  jax.random.uniform(k[5], (Dout,),    minval=-scale, maxval=scale),
        "Wt_I": jax.random.uniform(k[6], (Din, Dout), minval=-scale, maxval=scale),
        "b_I":  jax.random.uniform(k[7], (Dout,),    minval=-scale, maxval=scale),
        "Wt_S": jax.random.uniform(k[8], (Din, Dout), minval=-scale, maxval=scale),
        "b_S":  jax.random.uniform(k[9], (Dout,),    minval=-scale, maxval=scale),
        "gamma": 1.0 + 0.1 * jax.random.normal(k[10], (Dout,)),
        "beta":  0.1 * jax.random.normal(k[11], (Dout,)),
    }

    # Small tiles so the test exercises the (row-tile, K-block) grid, the
    # block-sparse schedule, and the BN partial reduction.
    out = compgcn_forward(node_embs, edge_embs, src, dst, params,
                          tile_n=32, kblk=128)
    out = jax.block_until_ready(out)
    assert out.shape == (N, Dout)
    assert bool(jnp.all(jnp.isfinite(out)))

    # Check vs a reference fed the same bf16-quantized matmul operands the
    # kernel consumes (remaining diff: in-kernel bf16 rounding of aggregates
    # and the bf16 inter-kernel h).
    q = lambda x: x.astype(jnp.bfloat16).astype(jnp.float32)
    params_q = dict(params)
    for name in ("Wt_O", "Wt_I", "Wt_S"):
        params_q[name] = q(params[name])
    ref_q = _reference(q(node_embs), q(edge_embs), src, dst, params_q)
    assert jnp.allclose(out, ref_q, atol=3e-2, rtol=3e-2), "mismatch vs bf16-operand reference"

    # Loose sanity bound vs the full-precision reference.
    ref = _reference(node_embs, edge_embs, src, dst, params)
    assert jnp.allclose(out, ref, atol=1.5e-1, rtol=1.5e-1), "mismatch vs f32 reference"

    print("KERNEL_OK")
</pallas_src>

<mosaic_0001>
module attributes {stable_mosaic.version = 11 : i64} {
  func.func @_compgcn_msg_proj_kernel(%arg0: i32, %arg1: i32, %arg2: memref<3xi32, #tpu.memory_space<smem>>, %arg3: memref<6xi32, #tpu.memory_space<smem>>, %arg4: memref<32x128xi8, #tpu.memory_space<vmem>>, %arg5: memref<32x128xi8, #tpu.memory_space<vmem>>, %arg6: memref<32x2xf32, #tpu.memory_space<vmem>>, %arg7: memref<32x128xbf16, #tpu.memory_space<vmem>>, %arg8: memref<128x128xbf16, #tpu.memory_space<vmem>>, %arg9: memref<384x128xbf16, #tpu.memory_space<vmem>>, %arg10: memref<32x128xbf16, #tpu.memory_space<vmem>>, %arg11: memref<1x2x128xf32, #tpu.memory_space<vmem>>, %arg12: memref<32x128xf32, #tpu.memory_space<vmem>>, %arg13: memref<32x128xf32, #tpu.memory_space<vmem>>) attributes {dimension_semantics = [#tpu.dimension_semantics<parallel>, #tpu.dimension_semantics<arbitrary>], iteration_bounds = array<i64: 3, 2>, scalar_prefetch = 2 : i64, scratch_operands = 2 : i64, tpu.core_type = #tpu.core_type<tc>, window_params = [{transform_indices = @transform_0, window_bounds = array<i64: 32, 128>}, {transform_indices = @transform_1, window_bounds = array<i64: 32, 128>}, {transform_indices = @transform_2, window_bounds = array<i64: 32, 2>}, {transform_indices = @transform_3, window_bounds = array<i64: 32, 128>}, {transform_indices = @transform_4, window_bounds = array<i64: 128, 128>}, {pipeline_mode = #tpu.pipeline_mode<synchronous>, transform_indices = @transform_5, window_bounds = array<i64: 384, 128>}, {transform_indices = @transform_6, window_bounds = array<i64: 32, 128>}, {transform_indices = @transform_7, window_bounds = array<i64: 1, 2, 128>}]} {
    %c0_i32 = arith.constant 0 : i32
    %0 = arith.cmpi eq, %arg1, %c0_i32 : i32
    %1 = arith.extui %0 : i1 to i32
    %c0_i32_0 = arith.constant 0 : i32
    %2 = arith.cmpi ne, %1, %c0_i32_0 : i32
    scf.if %2 {
      %cst = arith.constant 0.000000e+00 : f32
      %11 = vector.broadcast %cst : f32 to vector<32x128xf32>
      %c0 = arith.constant 0 : index
      %c0_3 = arith.constant 0 : index
      %12 = vector.load %arg12[%c0, %c0_3] : memref<32x128xf32, #tpu.memory_space<vmem>>, vector<32x128xf32>
      tpu.vector_store %arg12[%c0, %c0_3], %11 {strides = array<i32>} : memref<32x128xf32, #tpu.memory_space<vmem>>, vector<32x128xf32>,
      %cst_4 = arith.constant 0.000000e+00 : f32
      %13 = vector.broadcast %cst_4 : f32 to vector<32x128xf32>
      %c0_5 = arith.constant 0 : index
      %c0_6 = arith.constant 0 : index
      %14 = vector.load %arg13[%c0_5, %c0_6] : memref<32x128xf32, #tpu.memory_space<vmem>>, vector<32x128xf32>
      tpu.vector_store %arg13[%c0_5, %c0_6], %13 {strides = array<i32>} : memref<32x128xf32, #tpu.memory_space<vmem>>, vector<32x128xf32>,
    } else {
    }
    %3 = arith.index_cast %arg0 : i32 to index
    %4 = memref.load %arg2[%3] : memref<3xi32, #tpu.memory_space<smem>>
    %5 = arith.cmpi slt, %arg1, %4 : i32
    %6 = arith.extui %5 : i1 to i32
    %c0_i32_1 = arith.constant 0 : i32
    %7 = arith.cmpi ne, %6, %c0_i32_1 : i32
    scf.if %7 {
      %c0 = arith.constant 0 : index
      %c0_3 = arith.constant 0 : index
      %11 = vector.load %arg8[%c0, %c0_3] : memref<128x128xbf16, #tpu.memory_space<vmem>>, vector<128x128xbf16>
      %c0_4 = arith.constant 0 : index
      %c0_5 = arith.constant 0 : index
      %12 = vector.load %arg4[%c0_4, %c0_5] : memref<32x128xi8, #tpu.memory_space<vmem>>, vector<32x128xi8>
      %13 = arith.extsi %12 : vector<32x128xi8> to vector<32x128xi32>
      %14 = arith.sitofp %13 : vector<32x128xi32> to vector<32x128xf32>
      %15 = arith.truncf %14 : vector<32x128xf32> to vector<32x128xbf16>
      %c0_6 = arith.constant 0 : index
      %c0_7 = arith.constant 0 : index
      %16 = vector.load %arg5[%c0_6, %c0_7] : memref<32x128xi8, #tpu.memory_space<vmem>>, vector<32x128xi8>
      %17 = arith.extsi %16 : vector<32x128xi8> to vector<32x128xi32>
      %18 = arith.sitofp %17 : vector<32x128xi32> to vector<32x128xf32>
      %19 = arith.truncf %18 : vector<32x128xf32> to vector<32x128xbf16>
      %c0_8 = arith.constant 0 : index
      %c0_9 = arith.constant 0 : index
      %20 = vector.load %arg12[%c0_8, %c0_9] : memref<32x128xf32, #tpu.memory_space<vmem>>, vector<32x128xf32>
      %cst = arith.constant dense<0.000000e+00> : vector<32x128xf32>
      %21 = tpu.matmul %15, %11, %cst {dimension_numbers = #tpu.dot_dimension_numbers<[1], [0], [0], [1], [0, 0, 1, 1], [], []>} : vector<32x128xbf16>, vector<128x128xbf16>, vector<32x128xf32> -> vector<32x128xf32>
      %22 = arith.addf %20, %21 : vector<32x128xf32>
      %c0_10 = arith.constant 0 : index
      %c0_11 = arith.constant 0 : index
      %23 = vector.load %arg12[%c0_10, %c0_11] : memref<32x128xf32, #tpu.memory_space<vmem>>, vector<32x128xf32>
      tpu.vector_store %arg12[%c0_10, %c0_11], %22 {strides = array<i32>} : memref<32x128xf32, #tpu.memory_space<vmem>>, vector<32x128xf32>,
      %c0_12 = arith.constant 0 : index
      %c0_13 = arith.constant 0 : index
      %24 = vector.load %arg13[%c0_12, %c0_13] : memref<32x128xf32, #tpu.memory_space<vmem>>, vector<32x128xf32>
      %cst_14 = arith.constant dense<0.000000e+00> : vector<32x128xf32>
      %25 = tpu.matmul %19, %11, %cst_14 {dimension_numbers = #tpu.dot_dimension_numbers<[1], [0], [0], [1], [0, 0, 1, 1], [], []>} : vector<32x128xbf16>, vector<128x128xbf16>, vector<32x128xf32> -> vector<32x128xf32>
      %26 = arith.addf %24, %25 : vector<32x128xf32>
      %c0_15 = arith.constant 0 : index
      %c0_16 = arith.constant 0 : index
      %27 = vector.load %arg13[%c0_15, %c0_16] : memref<32x128xf32, #tpu.memory_space<vmem>>, vector<32x128xf32>
      tpu.vector_store %arg13[%c0_15, %c0_16], %26 {strides = array<i32>} : memref<32x128xf32, #tpu.memory_space<vmem>>, vector<32x128xf32>,
    } else {
    }
    %c1_i32 = arith.constant 1 : i32
    %8 = arith.cmpi eq, %arg1, %c1_i32 : i32
    %9 = arith.extui %8 : i1 to i32
    %c0_i32_2 = arith.constant 0 : i32
    %10 = arith.cmpi ne, %9, %c0_i32_2 : i32
    scf.if %10 {
      %c0 = arith.constant 0 : index
      %c0_3 = arith.constant 0 : index
      %11 = vector.load %arg6[%c0, %c0_3] : memref<32x2xf32, #tpu.memory_space<vmem>>, vector<32x1xf32>
      %c0_4 = arith.constant 0 : index
      %c0_5 = arith.constant 0 : index
      %12 = vector.load %arg12[%c0_4, %c0_5] : memref<32x128xf32, #tpu.memory_space<vmem>>, vector<32x128xf32>
      %13 = vector.broadcast %11 : vector<32x1xf32> to vector<32x128xf32>
      %14 = arith.mulf %13, %12 : vector<32x128xf32>
      %15 = arith.truncf %14 : vector<32x128xf32> to vector<32x128xbf16>
      %c0_6 = arith.constant 0 : index
      %c1 = arith.constant 1 : index
      %16 = vector.load %arg6[%c0_6, %c1] : memref<32x2xf32, #tpu.memory_space<vmem>>, vector<32x1xf32>
      %c0_7 = arith.constant 0 : index
      %c0_8 = arith.constant 0 : index
      %17 = vector.load %arg13[%c0_7, %c0_8] : memref<32x128xf32, #tpu.memory_space<vmem>>, vector<32x128xf32>
      %18 = vector.broadcast %16 : vector<32x1xf32> to vector<32x128xf32>
      %19 = arith.mulf %18, %17 : vector<32x128xf32>
      %20 = arith.truncf %19 : vector<32x128xf32> to vector<32x128xbf16>
      %c0_9 = arith.constant 0 : index
      %c0_10 = arith.constant 0 : index
      %21 = vector.load %arg9[%c0_9, %c0_10] : memref<384x128xbf16, #tpu.memory_space<vmem>>, vector<128x128xbf16>
      %cst = arith.constant dense<0.000000e+00> : vector<32x128xf32>
      %22 = tpu.matmul %15, %21, %cst {dimension_numbers = #tpu.dot_dimension_numbers<[1], [0], [0], [1], [0, 0, 1, 1], [], []>} : vector<32x128xbf16>, vector<128x128xbf16>, vector<32x128xf32> -> vector<32x128xf32>
      %c128 = arith.constant 128 : index
      %c0_11 = arith.constant 0 : index
      %23 = vector.load %arg9[%c128, %c0_11] : memref<384x128xbf16, #tpu.memory_space<vmem>>, vector<128x128xbf16>
      %cst_12 = arith.constant dense<0.000000e+00> : vector<32x128xf32>
      %24 = tpu.matmul %20, %23, %cst_12 {dimension_numbers = #tpu.dot_dimension_numbers<[1], [0], [0], [1], [0, 0, 1, 1], [], []>} : vector<32x128xbf16>, vector<128x128xbf16>, vector<32x128xf32> -> vector<32x128xf32>
      %25 = arith.addf %22, %24 : vector<32x128xf32>
      %c0_13 = arith.constant 0 : index
      %c0_14 = arith.constant 0 : index
      %26 = vector.load %arg7[%c0_13, %c0_14] : memref<32x128xbf16, #tpu.memory_space<vmem>>, vector<32x128xbf16>
      %c256 = arith.constant 256 : index
      %c0_15 = arith.constant 0 : index
      %27 = vector.load %arg9[%c256, %c0_15] : memref<384x128xbf16, #tpu.memory_space<vmem>>, vector<128x128xbf16>
      %cst_16 = arith.constant dense<0.000000e+00> : vector<32x128xf32>
      %28 = tpu.matmul %26, %27, %cst_16 {dimension_numbers = #tpu.dot_dimension_numbers<[1], [0], [0], [1], [0, 0, 1, 1], [], []>} : vector<32x128xbf16>, vector<128x128xbf16>, vector<32x128xf32> -> vector<32x128xf32>
      %29 = arith.addf %25, %28 : vector<32x128xf32>
      %30 = arith.truncf %29 : vector<32x128xf32> to vector<32x128xbf16>
      %c0_17 = arith.constant 0 : index
      %c0_18 = arith.constant 0 : index
      %31 = vector.load %arg10[%c0_17, %c0_18] : memref<32x128xbf16, #tpu.memory_space<vmem>>, vector<32x128xbf16>
      tpu.vector_store %arg10[%c0_17, %c0_18], %30 {strides = array<i32>} : memref<32x128xbf16, #tpu.memory_space<vmem>>, vector<32x128xbf16>,
      %cst_19 = arith.constant dense<0.000000e+00> : vector<128xf32>
      %32 = vector.multi_reduction <add>, %29, %cst_19 [0] : vector<32x128xf32> to vector<128xf32>
      %33 = vector.shape_cast %32 : vector<128xf32> to vector<1x128xf32>
      %34 = arith.mulf %29, %29 : vector<32x128xf32>
      %cst_20 = arith.constant dense<0.000000e+00> : vector<128xf32>
      %35 = vector.multi_reduction <add>, %34, %cst_20 [0] : vector<32x128xf32> to vector<128xf32>
      %36 = vector.shape_cast %35 : vector<128xf32> to vector<1x128xf32>
      %37 = tpu.concatenate %33, %36 in 0 : vector<1x128xf32>, vector<1x128xf32> -> vector<2x128xf32>
      %38 = vector.shape_cast %37 : vector<2x128xf32> to vector<1x2x128xf32>
      %c0_21 = arith.constant 0 : index
      %c0_22 = arith.constant 0 : index
      %c0_23 = arith.constant 0 : index
      %39 = vector.load %arg11[%c0_21, %c0_22, %c0_23] : memref<1x2x128xf32, #tpu.memory_space<vmem>>, vector<1x2x128xf32>
      tpu.vector_store %arg11[%c0_21, %c0_22, %c0_23], %38 {strides = array<i32>} : memref<1x2x128xf32, #tpu.memory_space<vmem>>, vector<1x2x128xf32>,
    } else {
    }
    return
  }
  func.func @transform_0(%arg0: i32, %arg1: i32, %arg2: memref<3xi32, #tpu.memory_space<smem>>, %arg3: memref<6xi32, #tpu.memory_space<smem>>) -> (i32, i32) {
    %c2_i32 = arith.constant 2 : i32
    %0 = arith.muli %arg0, %c2_i32 : i32
    %1 = arith.addi %0, %arg1 : i32
    %2 = arith.index_cast %1 : i32 to index
    %3 = memref.load %arg3[%2] : memref<6xi32, #tpu.memory_space<smem>>
    %c0_i32 = arith.constant 0 : i32
    return %arg0, %3 : i32, i32
  }
  func.func @transform_1(%arg0: i32, %arg1: i32, %arg2: memref<3xi32, #tpu.memory_space<smem>>, %arg3: memref<6xi32, #tpu.memory_space<smem>>) -> (i32, i32) {
    %c2_i32 = arith.constant 2 : i32
    %0 = arith.muli %arg0, %c2_i32 : i32
    %1 = arith.addi %0, %arg1 : i32
    %2 = arith.index_cast %1 : i32 to index
    %3 = memref.load %arg3[%2] : memref<6xi32, #tpu.memory_space<smem>>
    %c0_i32 = arith.constant 0 : i32
    return %arg0, %3 : i32, i32
  }
  func.func @transform_2(%arg0: i32, %arg1: i32, %arg2: memref<3xi32, #tpu.memory_space<smem>>, %arg3: memref<6xi32, #tpu.memory_space<smem>>) -> (i32, i32) {
    %c0_i32 = arith.constant 0 : i32
    %c0_i32_0 = arith.constant 0 : i32
    return %arg0, %c0_i32 : i32, i32
  }
  func.func @transform_3(%arg0: i32, %arg1: i32, %arg2: memref<3xi32, #tpu.memory_space<smem>>, %arg3: memref<6xi32, #tpu.memory_space<smem>>) -> (i32, i32) {
    %c0_i32 = arith.constant 0 : i32
    %c0_i32_0 = arith.constant 0 : i32
    return %arg0, %c0_i32 : i32, i32
  }
  func.func @transform_4(%arg0: i32, %arg1: i32, %arg2: memref<3xi32, #tpu.memory_space<smem>>, %arg3: memref<6xi32, #tpu.memory_space<smem>>) -> (i32, i32) {
    %c2_i32 = arith.constant 2 : i32
    %0 = arith.muli %arg0, %c2_i32 : i32
    %1 = arith.addi %0, %arg1 : i32
    %2 = arith.index_cast %1 : i32 to index
    %3 = memref.load %arg3[%2] : memref<6xi32, #tpu.memory_space<smem>>
    %c0_i32 = arith.constant 0 : i32
    %c0_i32_0 = arith.constant 0 : i32
    return %3, %c0_i32 : i32, i32
  }
  func.func @transform_5(%arg0: i32, %arg1: i32, %arg2: memref<3xi32, #tpu.memory_space<smem>>, %arg3: memref<6xi32, #tpu.memory_space<smem>>) -> (i32, i32) {
    %c0_i32 = arith.constant 0 : i32
    %c0_i32_0 = arith.constant 0 : i32
    %c0_i32_1 = arith.constant 0 : i32
    return %c0_i32, %c0_i32_0 : i32, i32
  }
  func.func @transform_6(%arg0: i32, %arg1: i32, %arg2: memref<3xi32, #tpu.memory_space<smem>>, %arg3: memref<6xi32, #tpu.memory_space<smem>>) -> (i32, i32) {
    %c0_i32 = arith.constant 0 : i32
    %c0_i32_0 = arith.constant 0 : i32
    return %arg0, %c0_i32 : i32, i32
  }
  func.func @transform_7(%arg0: i32, %arg1: i32, %arg2: memref<3xi32, #tpu.memory_space<smem>>, %arg3: memref<6xi32, #tpu.memory_space<smem>>) -> (i32, i32, i32) {
    %c0_i32 = arith.constant 0 : i32
    %c0_i32_0 = arith.constant 0 : i32
    %c0_i32_1 = arith.constant 0 : i32
    return %arg0, %c0_i32, %c0_i32_0 : i32, i32, i32
  }
}

</mosaic_0001>

<bundles_post_ra>
// kernel: tpu_custom_call.1
= control target key start
LH: loop header
LB: loop body
LE: loop exit
PB: predicated region body
PF: predicated region fallthrough
CT: control target
= control target key end

     0   :  { %s2640_s0 = inlined_call_operand.vmem [shape: s32[3], index: 0, kind: input, shape index: {}]   ;;  %s2641_s2 = inlined_call_operand.vmem [shape: s8[96,256], index: 2, kind: input, shape index: {}]   ;;  %s2642_s3 = inlined_call_operand.vmem [shape: s8[96,256], index: 3, kind: input, shape index: {}]   ;;  %s2643_s4 = inlined_call_operand.vmem [shape: f32[96,2], index: 4, kind: input, shape index: {}]   ;;  %s2644_s5 = inlined_call_operand.hbm [shape: bf16[96,128], index: 5, kind: input, shape index: {}]   ;;  %s2645_s6 = inlined_call_operand.hbm [shape: bf16[256,128], index: 6, kind: input, shape index: {}]   ;;  %s2646_s7 = inlined_call_operand.hbm [shape: bf16[384,128], index: 7, kind: input, shape index: {}]   ;;  %s2647_s8 = inlined_call_operand.hbm [shape: bf16[96,128], index: 8, kind: output, shape index: {0}]   ;;  %s2648_s9 = inlined_call_operand.hbm [shape: f32[3,2,128], index: 9, kind: output, shape index: {1}]   ;;  %s2649_s1 = inlined_call_operand.vmem [shape: s32[6], index: 1, kind: input, shape index: {}]  }
   0x1   :  { %2674 = sst [smem:[#allocation35_spill]] %s2641_s2  ;;  %s15_s11 = sshll.u32 %s2640_s0, 4  ;;  %s16_s11 = int_to_ptr.vmem [resolvable:$true] %s15_s11 }
   0x2   :  { %2675 = sst [smem:[#allocation36_spill]] %s2642_s3  ;;  %s19_s14 = sshll.u32 %s2649_s1, 4  ;;  %s20_s14 = int_to_ptr.vmem [resolvable:$true] %s19_s14 }
   0x3   :  { %2676 = sst [smem:[#allocation37_spill]] %s2643_s4  ;;  %s1863_s15 = scalar_lea.vmem %s16_s11, 16 }
   0x4   :  { %2677 = sst [smem:[#allocation38_spill]] %s2644_s5  ;;  %p1864_p0 = scmp.ne.s32.totalorder %s16_s11, %s1863_s15 }
   0x5   :  { %2678 = sst [smem:[#allocation39_spill]] %s2645_s6  ;;  %p1868_p1 = scmp.lt.s32.totalorder %s16_s11, %s16_s11 }
   0x6   :  { %2679 = sst [smem:[#allocation40_spill]] %s2646_s7  ;;  %p1869_p2 = scmp.lt.s32.totalorder %s1863_s15, %s1863_s15 }
   0x7   :  { %2680 = sst [smem:[#allocation41_spill]] %s2647_s8 }
   0x8   :  { %2681 = sst [smem:[#allocation42_spill]] %s2648_s9  ;;  %p1870_p3 = por %p1869_p2, %p1868_p1 }
   0xa   :  { %p1871_p4 = pnand %p1870_p3, %p1864_p0 }
   0xc   :  { %1874 = shalt.err (!%p1871_p4)  }
   0xd   :  { %s2141_s16 = smov [#allocation5]   ;;  %s1875_s17 = scalar_lea.vmem %s20_s14, 16 }
   0xe   :  { %18 = dma.vmem_to_smem %s16_s11, 16, %s2141_s16, [#allocation4] }
   0xf   :  { %p1876_p5 = scmp.ne.s32.totalorder %s20_s14, %s1875_s17  ;;  %p1880_p6 = scmp.lt.s32.totalorder %s20_s14, %s20_s14 }
  0x10   :  { %p1881_p7 = scmp.lt.s32.totalorder %s1875_s17, %s1875_s17 }
  0x12   :  { %p1882_p8 = por %p1881_p7, %p1880_p6 }
  0x14   :  { %p1883_p9 = pnand %p1882_p8, %p1876_p5 }
  0x16   :  { %1886 = shalt.err (!%p1883_p9)  }
  0x17   :  { %s2142_s0 = smov [#allocation6]  }
  0x18   :  { %22 = dma.vmem_to_smem %s20_s14, 16, %s2142_s0, [#allocation4] }
  0x19   :  { %2075 = dma.done.wait [#allocation4], 32 }
  0x1a   :  { %2076 = vsyncadd [#allocation4], 4294967264 }
  0x1b   :  { %24 = sfence }
  0x1c   :  { %25 = vsyncpa [#allocation8], 0 }
  0x1d   :  { %27 = vsyncpa [#allocation8 + $0x1], 0 }
  0x1e   :  { %28 = vsyncpa [#allocation11], 0 }
  0x1f   :  { %30 = vsyncpa [#allocation11 + $0x1], 0 }
  0x20   :  { %31 = vsyncpa [#allocation9], 0 }
  0x21   :  { %33 = vsyncpa [#allocation9 + $0x1], 0 }
  0x22   :  { %34 = vsyncpa [#allocation15], 0 }
  0x23   :  { %36 = vsyncpa [#allocation15 + $0x1], 0  ;;  %s2211_s1 = smov 0   ;;  %s2213_s18 = smov 0  }
  0x24   :  { %s2215_s19 = smov 0   ;;  %s2217_s20 = smov 0  }
  0x25   :  { %s2219_s21 = smov 0   ;;  %s2221_s22 = smov 0  }
  0x26   :  { %s2223_s23 = smov 0   ;;  %s2225_s24 = smov 0  }
  0x27   :  { %s2227_s25 = smov 0   ;;  %s2229_s26 = smov 0  }
  0x28   :  { %s2231_s27 = smov 0  }
  0x29 LB: > { %2682 = sst [smem:[#allocation24_spill]] %s2111_s20  ;;  %s2265_s28 = sadd.s32 4294967295, %s2139_s27   ;;  %s2139_s27 = sphi %s2231_s27, %s42_s27   ;;  %s2135_s26 = sphi %s2229_s26, %s2737_s26   ;;  %s2131_s25 = sphi %s2227_s25, %s2736_s25   ;;  %s2127_s24 = sphi %s2225_s24, %s2735_s24   ;;  %s2123_s23 = sphi %s2223_s23, %s2734_s23   ;;  %s2119_s22 = sphi %s2221_s22, %s2733_s22   ;;  %s2115_s21 = sphi %s2219_s21, %s2732_s21   ;;  %s2111_s20 = sphi %s2217_s20, %s2731_s20   ;;  %s2107_s19 = sphi %s2215_s19, %s2740_s19   ;;  %s2103_s18 = sphi %s2213_s18, %s2739_s18   ;;  %s2099_s1 = sphi %s2211_s1, %s2738_s1  }
  0x2a   : > { %2683 = sst [smem:[#allocation25_spill]] %s2115_s21  ;;  %s1434_s29 = sadd.s32 4294967294, %s2139_s27  }
  0x2b   : > { %2684 = sst [smem:[#allocation26_spill]] %s2119_s22  ;;  %p168_p10 = scmp.ne.s32.totalorder %s2115_s21, %s2111_s20 }
  0x2c   : > { %2685 = sst [smem:[#allocation27_spill]] %s2123_s23  ;;  %p2652_p11 = scmp.eq.s32.totalorder %s2265_s28, 0 }
  0x2d   : > { %2686 = sst [smem:[#allocation28_spill]] %s2131_s25  ;;  %p200_p12 = scmp.ne.s32.totalorder %s2103_s18, %s2099_s1 }
  0x2e   : > { %2687 = sst [smem:[#allocation29_spill]] %s2135_s26  ;;  %p2275_p0 = por %p2652_p11, %p168_p10 }
  0x2f   : > { %p251_p1 = scmp.eq.s32.totalorder %s1434_s29, 5  ;;  %p2281_p2 = por %p200_p12, %p2652_p11 }
  0x30   : > { %s2688_s30 = scalar_select %p2275_p0, 1, 0 }
  0x31   : > { %s2689_s10 = scalar_select %p2281_p2, 1, 0 }
  0x32   : > { %p1441_p3 = scmp.ge.s32.totalorder %s2139_s27, 1  ;;  %p2286_p4 = por %p251_p1, %p168_p10 }
  0x33   : > { %p284_p5 = scmp.lt.s32.totalorder %s2139_s27, 7  ;;  %s2143_s13 = smov [#allocation12]  }
  0x34   : > { %s2690_s11 = scalar_select %p2286_p4, 1, 0 }
  0x35   : > { %p2291_p6 = pnand %p1441_p3, %p284_p5  ;;  %s296_s14 = sshll.u32 %s2143_s13, 4  ;;  %s297_s14 = int_to_ptr.vmem [resolvable:$true] %s296_s14 }
  0x36   : > { %2691 = sst [smem:[#allocation30_spill]] %s2690_s11  ;;  %s2694_s7 = sld [smem:[#allocation40_spill]] }
  0x37   : > { %s2692_s12 = scalar_select %p2291_p6, 1, 0 }
  0x38   : > { %p1703_p7 = pneg %p2291_p6 }
  0x3a   : > { %p2299_p8 = pnand %p1703_p7, %p2652_p11 }
  0x3c   : > { %s1887_s0 = scalar_lea.hbm %s2694_s7, 3072  ;;  %p1889_p10 = pneg %p2299_p8 }
  0x3d   : > { %p1888_p9 = scmp.ne.s32.totalorder %s2694_s7, %s1887_s0  ;;  %p1894_p3 = scmp.lt.u32.totalorder %s1887_s0, %s2694_s7 }
  0x3f   : > { %p1890_p12 = pnand %p1889_p10, %p1888_p9 }
  0x41   : > { %p1891_p1 = pneg %p1890_p12 }
  0x43   : > { %p1896_p5 = pnand %p1894_p3, %p1891_p1 }
  0x45   : > { %1899 = shalt.err (!%p1896_p5)
}
  0x46   : > { %s1900_s20 = scalar_lea.vmem %s297_s14, 3072  ;;  %p1908_p4 = scmp.lt.s32.totalorder %s297_s14, %s297_s14 }
  0x47   : > { %p1901_p7 = scmp.ne.s32.totalorder %s297_s14, %s1900_s20  ;;  %p1909_p2 = scmp.lt.s32.totalorder %s1900_s20, %s1900_s20 }
  0x49   : > { %p1903_p11 = pnand %p1901_p7, %p1889_p10  ;;  %p1910_p0 = por %p1909_p2, %p1908_p4 }
  0x4b   : > { %p1904_p13 = pneg %p1903_p11 }
  0x4d   : > { %p1911_p6 = pnand %p1910_p0, %p1904_p13 }
  0x4f   : > { %1914 = shalt.err (!%p1911_p6)
}
  0x50   : > { %s2656_s16 = smov 64   ;;  %s2658_s11 = smov 4  }
  0x51   : > { %1706 = dma.hbm_to_vmem [thread:$0]  (!%p2299_p8), %s2694_s7, 3072, %s297_s14, [#allocation11], %s2656_s16, %s2656_s16, %s2658_s11  }
  0x52   : > { %s51_s0 = sadd.s32 1, %s2131_s25  ;;  %s54_s1 = sadd.s32 1, %s2135_s26 }
  0x53   : > { %p52_p11 = scmp.ge.s32.totalorder %s51_s0, 2  ;;  %s155_s29 = sadd.s32 1, %s2119_s22 }
  0x54   : > { %p162_p13 = scmp.ne.s32.totalorder %s2119_s22, %s2115_s21  ;;  %p2666_p0 = scmp.eq.s32.totalorder %s2139_s27, 0 }
  0x55   : > { %s2742_s0 = smov (%p52_p11, %s51_s0), 0  ;;  %s2744_s1 = smov (!%p52_p11, %s54_s1), %s2135_s26 }
  0x56   : > { %2695 = sst [smem:[#allocation31_spill]] %s2742_s0  ;;  %p2696_p2 = scmp.eq.s32.totalorder %s2265_s28, 5 }
  0x57   : > { %p56_p6 = scmp.ge.s32.totalorder %s2744_s1, 3  ;;  %p2665_p8 = scmp.lt.s32.totalorder %s2139_s27, 6 }
  0x58   : > { %p2333_p4 = por %p2696_p2, %p162_p13  ;;  %p2340_p9 = por %p2666_p0, %p162_p13 }
  0x59   : > { %s353_s13 = sand.u32 1, %s2119_s22   ;;  %s2746_s1 = smov (%p56_p6, %s2744_s1), 0 }
  0x5a   : > { %s2697_s15 = scalar_select %p2333_p4, 1, 0 }
  0x5b   : > { %2700 = sst [smem:[#allocation33_spill]] %s2746_s1  ;;  %s1444_s20 = sshll.u32 %s353_s13, 4 }
  0x5c   : > { %2698 = sst [smem:[#allocation32_spill]] %s2697_s15  ;;  %s152_s17 = ssub.s32 %s2135_s26, %s2746_s1 }
  0x5d   : > { %s1440_s16 = sshll.u32 %s2746_s1, 1  ;;  %p153_p10 = scmp.eq.s32.totalorder %s152_s17, 0 }
  0x5e   : > { %s182_s11 = sadd.s32 %s1440_s16, %s2742_s0  ;;  %s1513_s8 = sshll.u32 %s2135_s26, 8 }
  0x5f   : > { %s2351_s7 = sld [smem:[#allocation6 + %s182_s11]]  ;;  %s357_s15 = scalar_lea.vmem [#allocation7], %s1444_s20 }
  0x60   : > { %s2354_s9 = scalar_select %p153_p10, %s2119_s22, %s155_s29  }
  0x61   : > { %s364_s4 = sshll.u32 %s357_s15, 4  ;;  %s2702_s5 = sld [smem:[#allocation38_spill]]  ;;  %s2362_s4 = int_to_ptr.vmem [resolvable:$true] %s364_s4 }
  0x62   : > { %2701 = sst [smem:[#allocation34_spill]] %s2354_s9  ;;  %p2368_p12 = pnand %p2665_p8, %p2340_p9 }
  0x63   : > { %s1439_s11 = sshll.u32 %s2135_s26, 1  ;;  %s2376_s2 = scalar_lea.sflag [#allocation8], %s353_s13 }
  0x64   : > { %s2374_s29 = sadd.s32 %s2131_s25, %s1439_s11  ;;  %p1917_p3 = pneg %p2368_p12 }
  0x67   : > { %s2360_s23 = scalar_lea.hbm %s2702_s5, %s1513_s8  ;;  %s1920_s14 = scalar_lea.hbm %s2702_s5, 768 }
  0x68   : > { %s1915_s3 = scalar_lea.hbm %s2360_s23, 256  ;;  %p1921_p11 = scmp.lt.u32.totalorder %s2360_s23, %s2702_s5 }
  0x69   : > { %p1916_p1 = scmp.ne.s32.totalorder %s2360_s23, %s1915_s3  ;;  %p1922_p13 = scmp.lt.u32.totalorder %s1920_s14, %s1915_s3 }
  0x6a   : > { %p1924_p6 = scmp.lt.u32.totalorder %s1915_s3, %s2360_s23 }
  0x6b   : > { %p1918_p5 = pnand %p1917_p3, %p1916_p1  ;;  %p1923_p2 = por %p1922_p13, %p1921_p11 }
  0x6d   : > { %p1919_p7 = pneg %p1918_p5  ;;  %p1925_p9 = por %p1924_p6, %p1923_p2 }
  0x6f   : > { %p1926_p10 = pnand %p1925_p9, %p1919_p7 }
  0x71   : > { %1929 = shalt.err (!%p1926_p10)
}
  0x72   : > { %s1930_s13 = scalar_lea.vmem %s2362_s4, 256  ;;  %s2146_s11 = smov [#allocation7]  }
  0x73   : > { %p1931_p1 = scmp.ne.s32.totalorder %s2362_s4, %s1930_s13  ;;  %s1935_s8 = sshll.u32 %s2146_s11, 4  ;;  %s1936_s8 = int_to_ptr.vmem [resolvable:$false] %s1935_s8 }
  0x74   : > { %s1937_s15 = scalar_lea.vmem %s1936_s8, 512  ;;  %p1938_p0 = scmp.lt.s32.totalorder %s2362_s4, %s1936_s8 }
  0x75   : > { %p1933_p5 = pnand %p1931_p1, %p1917_p3  ;;  %p1939_p11 = scmp.lt.s32.totalorder %s1937_s15, %s1930_s13 }
  0x77   : > { %p1934_p8 = pneg %p1933_p5  ;;  %p1940_p13 = por %p1939_p11, %p1938_p0 }
  0x79   : > { %p1941_p2 = pnand %p1940_p13, %p1934_p8 }
  0x7b   : > { %1944 = shalt.err (!%p1941_p2)
}
  0x7c   : > { %s2704_s3 = smov 4   ;;  %s2705_s14 = smov 64  }
  0x7d   : > { %1710 = dma.hbm_to_vmem [thread:$0]  (!%p2368_p12), %s2360_s23, 256, %s2362_s4, %s2376_s2, %s2705_s14, %s2705_s14, %s2704_s3  }
  0x7e   : > { %s180_s16 = sld [smem:[#allocation6 + %s2374_s29]]  ;;  %p194_p0 = scmp.ne.s32.totalorder %s2107_s19, %s2103_s18 }
  0x7f   : > { %p2706_p8 = scmp.eq.s32.totalorder %s2139_s27, 0  ;;  %s376_s20 = sand.u32 1, %s2107_s19  }
  0x80   : > { %s187_s11 = sadd.s32 1, %s2107_s19  ;;  %s1447_s8 = sshll.u32 %s376_s20, 6 }
  0x81   : > { %p196_p3 = por %p194_p0, %p2706_p8  ;;  %p2707_p6 = scmp.lt.s32.totalorder %s2139_s27, 6 }
  0x82   : > { %s374_s2 = sand.u32 1, %s2139_s27   ;;  %s2711_s6 = sld [smem:[#allocation39_spill]] }
  0x83   : > { %s1692_s17 = scalar_select %p196_p3, [#allocation6], [#allocation16] }
  0x84   : > { %s184_s13 = ssub.s32 %s180_s16, %s2351_s7  ;;  %s2748_s29 = smov (!%p196_p3, %s2374_s29), 0 }
  0x85   : > { %p185_p7 = scmp.eq.s32.totalorder %s184_s13, 0  ;;  %s2750_s17 = smov (!%p2707_p6, %s1692_s17), [#allocation17] }
  0x86   : > { %p2708_p9 = pmov %p2707_p6  ;;  %p2709_p10 = pmov %p2707_p6 }
  0x87   : > { %s2417_s15 = scalar_select %p185_p7, %s2107_s19, %s187_s11  }
  0x88   : > { %s2752_s29 = smov (!%p2708_p9, %s2748_s29), 0  ;;  %p2425_p12 = pnand %p2709_p10, %p196_p3 }
  0x89   : > { %s381_s23 = sld [smem:[%s2750_s17 + %s2752_s29]]  ;;  %s378_s7 = scalar_lea.vmem [#allocation10], %s1447_s8 }
  0x8a   : > { %s388_s16 = sshll.u32 %s378_s7, 4  ;;  %s2437_s1 = scalar_lea.sflag [#allocation11], %s374_s2  ;;  %s2430_s16 = int_to_ptr.vmem [resolvable:$true] %s388_s16 }
  0x8b   : > { %p1947_p5 = pneg %p2425_p12  ;;  %s1950_s8 = scalar_lea.hbm %s2711_s6, 2048 }
  0x8f   : > { %s1514_s20 = sshll.u32 %s381_s23, 10 }
  0x90   : > { %s2435_s5 = scalar_lea.hbm %s2711_s6, %s1514_s20 }
  0x91   : > { %s1945_s0 = scalar_lea.hbm %s2435_s5, 1024  ;;  %p1951_p2 = scmp.lt.u32.totalorder %s2435_s5, %s2711_s6 }
  0x92   : > { %p1946_p1 = scmp.ne.s32.totalorder %s2435_s5, %s1945_s0  ;;  %p1952_p0 = scmp.lt.u32.totalorder %s1950_s8, %s1945_s0 }
  0x93   : > { %p1954_p3 = scmp.lt.u32.totalorder %s1945_s0, %s2435_s5 }
  0x94   : > { %p1948_p11 = pnand %p1947_p5, %p1946_p1  ;;  %p1953_p8 = por %p1952_p0, %p1951_p2 }
  0x96   : > { %p1949_p13 = pneg %p1948_p11  ;;  %p1955_p7 = por %p1954_p3, %p1953_p8 }
  0x98   : > { %p1956_p6 = pnand %p1955_p7, %p1949_p13 }
  0x9a   : > { %1959 = shalt.err (!%p1956_p6)
}
  0x9b   : > { %s1960_s2 = scalar_lea.vmem %s2430_s16, 1024  ;;  %s2147_s20 = smov [#allocation10]  }
  0x9c   : > { %p1961_p9 = scmp.ne.s32.totalorder %s2430_s16, %s1960_s2  ;;  %s1965_s13 = sshll.u32 %s2147_s20, 4  ;;  %s1966_s13 = int_to_ptr.vmem [resolvable:$false] %s1965_s13 }
  0x9d   : > { %s1967_s11 = scalar_lea.vmem %s1966_s13, 2048  ;;  %p1968_p11 = scmp.lt.s32.totalorder %s2430_s16, %s1966_s13 }
  0x9e   : > { %p1963_p10 = pnand %p1961_p9, %p1947_p5  ;;  %p1969_p2 = scmp.lt.s32.totalorder %s1967_s11, %s1960_s2 }
  0xa0   : > { %p1964_p1 = pneg %p1963_p10  ;;  %p1970_p0 = por %p1969_p2, %p1968_p11 }
  0xa2   : > { %p1971_p8 = pnand %p1970_p0, %p1964_p1 }
  0xa4   : > { %1974 = shalt.err (!%p1971_p8)
}
  0xa5   : > { %1715 = dma.hbm_to_vmem [thread:$0]  (!%p2425_p12), %s2435_s5, 1024, %s2430_s16, %s2437_s1, %s2705_s14, %s2705_s14, %s2704_s3  }
  0xa6   : > { %p2712_p5 = scmp.ne.s32.totalorder %s2692_s12, 0 }
  0xa7   : > { %s2471_s0 = sand.u32 (!%p2712_p5), 1, %s2115_s21   ;;  %p2713_p13 = scmp.ne.s32.totalorder (!%p2712_p5), %s2688_s30, 0 }
  0xa8   : > { %400 = sbr.rel (%p2712_p5) target bundleno = 931 (0x3a3), region = 44  ;;  %s2669_s29 = sshll.u32 (!%p2712_p5), %s2471_s0, 4 }
  0xa9   : > { %s403_s17 = scalar_lea.sflag (!%p2712_p5), [#allocation8], %s2471_s0  ;;  %s2477_s4 = scalar_lea.vmem (!%p2712_p5), [#allocation7], %s2669_s29 }
  0xaf   : > { %2078 = dma.done.wait (%p2713_p13), %s403_s17, 256  }
  0xb0   : > { %2080 = vsyncadd (%p2713_p13), %s403_s17, 4294967040  ;;  %s411_s5 = sand.u32 1, %s2265_s28   ;;  %s413_s12 = sand.u32 1, %s2103_s18  }
  0xb1   : > { %s1453_s1 = sshll.u32 %s413_s12, 6  ;;  %s412_s3 = scalar_lea.sflag [#allocation11], %s411_s5 }
  0xb2   : > { %s2485_s14 = scalar_lea.vmem [#allocation10], %s1453_s1  ;;  %p2714_p12 = scmp.ne.s32.totalorder %s2689_s10, 0 }
  0xb4   : > { %2082 = dma.done.wait (%p2714_p12), %s412_s3, 1024  }
  0xb5   : > { %2084 = vsyncadd (%p2714_p12), %s412_s3, 4294966272  ;;  %p2715_p3 = scmp.eq.s32.totalorder %s2265_s28, 0 }
  0xb7   : > { %2086 = dma.done.wait (%p2715_p3), [#allocation11], 3072   ;;  %p2716_p7 = pmov %p2715_p3 }
  0xb8   : > { %s2717_s30 = sld [smem:[#allocation27_spill]]  ;;  %s1457_s16 = sshll.u32 %s2127_s24, 1 }
  0xb9   : > { %2088 = vsyncadd (%p2716_p7), [#allocation11], 4294964224  ;;  %p490_p6 = scmp.lt.s32.totalorder %s2127_s24, 2  ;;  %s1456_s10 = sshll.u32 %s2471_s0, 1 }
  0xba   : > { %s1463_s20 = sshll.u32 %s2127_s24, 2  ;;  %s2718_s3 = sld [smem:[#allocation35_spill]] }
  0xbb   : > { %s491_s2 = scalar_select %p490_p6, %s2127_s24, 2 }
  0xbc   : > { %p516_p9 = scmp.lt.s32.totalorder %s1463_s20, 11  ;;  %s2719_s26 = sld [smem:[#allocation36_spill]] }
  0xbd   : > { %s1458_s13 = sshll.u32 %s491_s2, 1  ;;  %s2720_s22 = sld [smem:[#allocation37_spill]] }
  0xbe   : > { %s488_s8 = sadd.s32 %s2717_s30, %s1457_s16  ;;  %s2754_s20 = smov (!%p516_p9, %s1463_s20), 11 }
  0xbf   : > { %s489_s23 = sld [smem:[#allocation6 + %s488_s8]]  ;;  %s1464_s11 = sshll.u32 %s2754_s20, 3 }
  0xc0   : > { %s503_s7 = sld [smem:[#allocation6 + %s488_s8]]  ;;  %p1465_p11 = scmp.ne.s32.totalorder %s2717_s30, 0 }
  0xc1   : > { %v2148_v0 = vmov (!%p1465_p11), 0.0  }
  0xc2   : > { %532 = vst [vmem:[#allocation2] sm:$0xff] (!%p1465_p11), %v2148_v0  ;;  %533 = vst [vmem:[#allocation2 + $0x8] sm:$0xff] (!%p1465_p11), %v2148_v0 }
  0xc3   : > { %s2514_s21 = scalar_lea.vmem %s2720_s22, %s1464_s11  ;;  %534 = vst [vmem:[#allocation2 + $0x10] sm:$0xff] (!%p1465_p11), %v2148_v0  ;;  %535 = vst [vmem:[#allocation2 + $0x18] sm:$0xff] (!%p1465_p11), %v2148_v0 }
  0xc4   : > { %536 = vst [vmem:[#allocation3] sm:$0xff] (!%p1465_p11), %v2148_v0  ;;  %537 = vst [vmem:[#allocation3 + $0x8] sm:$0xff] (!%p1465_p11), %v2148_v0 }
  0xc5   : > { %p492_p10 = scmp.lt.s32.totalorder %s489_s23, 1  ;;  %538 = vst [vmem:[#allocation3 + $0x10] sm:$0xff] (!%p1465_p11), %v2148_v0  ;;  %539 = vst [vmem:[#allocation3 + $0x18] sm:$0xff] (!%p1465_p11), %v2148_v0 }
  0xc6   : > { %p506_p1 = scmp.lt.s32.totalorder %s503_s7, 1  ;;  %531 = sbr.rel (%p1465_p11) target bundleno = 205 (0xcd), region = 60 }
  0xc7   : > { %s2756_s23 = smov (!%p492_p10, %s489_s23), 1 }
  0xc8   : > { %s2758_s7 = smov (!%p506_p1, %s503_s7), 1  ;;  %s495_s28 = sadd.s32 %s1458_s13, %s2756_s23 }
  0xc9   : > { %s1459_s17 = sshll.u32 %s495_s28, 3  ;;  %s509_s5 = sadd.s32 %s1458_s13, %s2758_s7 }
  0xca   : > { %s2504_s16 = scalar_lea.vmem %s2718_s3, %s1459_s17  ;;  %s1462_s8 = sshll.u32 %s509_s5, 3 }
  0xcb   : > { %s2509_s25 = scalar_lea.vmem %s2719_s26, %s1462_s8  ;;  %s2721_s23 = sshll.u32 %s2471_s0, 4 }
  0xcc   : > { %s2518_s20 = scalar_lea.vmem [#allocation13], %s2721_s23  ;;  %s2520_s7 = scalar_lea.vmem [#allocation14], %s1456_s10 }
  0xcd PF: > { %s540_s6 = sld [smem:[#allocation5 + %s2127_s24]] }
  0xce   : > { %s2722_s9 = sld [smem:[#allocation27_spill]] }
  0xd4   : > { %p1466_p2 = scmp.ge.s32.totalorder %s2722_s9, %s540_s6 }
  0xd5   : > { %v1825_v1 = vld [vmem:[%s2485_s14] sm:$0xff] (!%p1466_p2)   ;;  %v1826_v2 = vld [vmem:[%s2485_s14 + $0x8] sm:$0xff] (!%p1466_p2)   ;;  %v1827_v3 = vld [vmem:[%s2485_s14 + $0x10] sm:$0xff] (!%p1466_p2)  }
  0xd6   : > { %544 = sbr.rel (%p1466_p2) target bundleno = 464 (0x1d0), region = 64  ;;  %1581 = vmatprep.subr.bf16.mxu0 (!%p1466_p2), %v1825_v1  ;;  %1601 = vmatprep.subr.bf16.mxu1 (!%p1466_p2), %v1825_v1  ;;  %v1828_v4 = vld [vmem:[%s2485_s14 + $0x18] sm:$0xff] (!%p1466_p2)   ;;  %v561_v5 = vld [vmem:[%s2504_s16] sm:$0xff] (!%p1466_p2)  ;;  %v1830_v10 = vld [vmem:[%s2485_s14 + $0x28] sm:$0xff] (!%p1466_p2)  }
  0xd7   : > { %1582 = vmatpush3.bf16.msra.mxu0 (!%p1466_p2), %v1825_v1  ;;  %1602 = vmatpush3.bf16.msra.mxu1 (!%p1466_p2), %v1825_v1  ;;  %v564_v6 = vld [vmem:[%s2509_s25] sm:$0xff] (!%p1466_p2)  ;;  %v562_v7 = vunpack.c.l.s8.bf16 (!%p1466_p2), %v561_v5  ;;  %v1831_v11 = vld [vmem:[%s2485_s14 + $0x30] sm:$0xff] (!%p1466_p2)   ;;  %v1832_v12 = vld [vmem:[%s2485_s14 + $0x38] sm:$0xff] (!%p1466_p2)   ;;  %v563_v13 = vunpack.c.h.s8.bf16 (!%p1466_p2), %v561_v5 }
  0xd8   : > { %1583 = vmatprep.subr.bf16.mxu0 (!%p1466_p2), %v1826_v2  ;;  %1603 = vmatprep.subr.bf16.mxu1 (!%p1466_p2), %v1826_v2  ;;  %v565_v8 = vunpack.c.l.s8.bf16 (!%p1466_p2), %v564_v6  ;;  %v1829_v9 = vld [vmem:[%s2485_s14 + $0x20] sm:$0xff] (!%p1466_p2)   ;;  %v566_v14 = vunpack.c.h.s8.bf16 (!%p1466_p2), %v564_v6  ;;  %v569_v15 = vld [vmem:[#allocation2 + $0x10] sm:$0xff] (!%p1466_p2)  ;;  %v570_v21 = vld [vmem:[#allocation2 + $0x18] sm:$0xff] (!%p1466_p2) }
  0xd9   : > { %1597 = vmatprep.mubr.bf16.mxu0 (!%p1466_p2), %v562_v7  ;;  %v678_v16 = vld [vmem:[#allocation3 + $0x10] sm:$0xff] (!%p1466_p2)  ;;  %v567_v17 = vld [vmem:[#allocation2] sm:$0xff] (!%p1466_p2)  ;;  %v679_v22 = vld [vmem:[#allocation3 + $0x18] sm:$0xff] (!%p1466_p2) }
  0xda   : > { %1617 = vmatprep.mubr.bf16.mxu1 (!%p1466_p2), %v565_v8  ;;  %v676_v18 = vld [vmem:[#allocation3] sm:$0xff] (!%p1466_p2)  ;;  %v568_v27 = vld [vmem:[#allocation2 + $0x8] sm:$0xff] (!%p1466_p2) }
  0xdb   : > { %1584 = vmatpush3.bf16.msra.mxu0 (!%p1466_p2), %v1826_v2  ;;  %1604 = vmatpush3.bf16.msra.mxu1 (!%p1466_p2), %v1826_v2  ;;  %v677_v28 = vld [vmem:[#allocation3 + $0x8] sm:$0xff] (!%p1466_p2) }
  0xdc   : > { %1585 = vmatprep.subr.bf16.mxu0 (!%p1466_p2), %v1827_v3  ;;  %1605 = vmatprep.subr.bf16.mxu1 (!%p1466_p2), %v1827_v3 }
  0xdf   : > { %1586 = vmatpush3.bf16.msra.mxu0 %v1827_v3  ;;  %1606 = vmatpush3.bf16.msra.mxu1 %v1827_v3 }
  0xe0   : > { %1587 = vmatprep.subr.bf16.mxu0 %v1828_v4  ;;  %1607 = vmatprep.subr.bf16.mxu1 %v1828_v4 }
  0xe3   : > { %1588 = vmatpush3.bf16.msra.mxu0 %v1828_v4  ;;  %1608 = vmatpush3.bf16.msra.mxu1 %v1828_v4 }
  0xe4   : > { %1589 = vmatprep.subr.bf16.mxu0 %v1829_v9  ;;  %1609 = vmatprep.subr.bf16.mxu1 %v1829_v9 }
  0xe7   : > { %1590 = vmatpush3.bf16.msra.mxu0 %v1829_v9  ;;  %1610 = vmatpush3.bf16.msra.mxu1 %v1829_v9 }
  0xe8   : > { %1591 = vmatprep.subr.bf16.mxu0 %v1830_v10  ;;  %1611 = vmatprep.subr.bf16.mxu1 %v1830_v10 }
  0xeb   : > { %1592 = vmatpush3.bf16.msra.mxu0 %v1830_v10  ;;  %1612 = vmatpush3.bf16.msra.mxu1 %v1830_v10 }
  0xec   : > { %1593 = vmatprep.subr.bf16.mxu0 %v1831_v11  ;;  %1613 = vmatprep.subr.bf16.mxu1 %v1831_v11 }
  0xef   : > { %1594 = vmatpush3.bf16.msra.mxu0 %v1831_v11  ;;  %1614 = vmatpush3.bf16.msra.mxu1 %v1831_v11 }
  0xf0   : > { %1595 = vmatprep.subr.bf16.mxu0 %v1832_v12  ;;  %1615 = vmatprep.subr.bf16.mxu1 %v1832_v12 }
  0xf3   : > { %1596 = vmatpush3.bf16.msra.mxu0 %v1832_v12  ;;  %1616 = vmatpush3.bf16.msra.mxu1 %v1832_v12 }
  0xf6   : > { %1598 = vmatmul.mubr.bf16.vlgmr.msra.gmra.mrb[0].mxu0 %v563_v13  ;;  %1618 = vmatmul.mubr.bf16.vlgmr.msra.gmra.mrb[0].mxu1 %v566_v14 }
 0x1c9   : > { %v1599_v19 = vpop.f32.mrb[0].mxu0  ;;  %v1619_v20 = vpop.f32.mrb[0].mxu1 }
 0x1ca   : > { %v670_v23 = vadd.f32 %v1599_v19, %v569_v15  ;;  %v731_v24 = vadd.f32 %v1619_v20, %v678_v16  ;;  %v653_v25 = vpop.f32.mrb[1].mxu0  ;;  %v714_v26 = vpop.f32.mrb[1].mxu1 }
 0x1cb   : > { %v668_v29 = vadd.f32 %v653_v25, %v567_v17  ;;  %v729_v30 = vadd.f32 %v714_v26, %v676_v18  ;;  %v1600_v31 = vpop.f32.mrb[2].mxu0  ;;  %v1620_v32 = vpop.f32.mrb[2].mxu1 }
 0x1cc   : > { %674 = vst [vmem:[#allocation2 + $0x10] sm:$0xff] %v670_v23  ;;  %735 = vst [vmem:[#allocation3 + $0x10] sm:$0xff] %v731_v24  ;;  %v671_v33 = vadd.f32 %v1600_v31, %v570_v21  ;;  %v732_v34 = vadd.f32 %v1620_v32, %v679_v22  ;;  %v656_v35 = vpop.f32.mrb[3].mxu0  ;;  %v717_v36 = vpop.f32.mrb[3].mxu1 }
 0x1cd   : > { %672 = vst [vmem:[#allocation2] sm:$0xff] %v668_v29  ;;  %733 = vst [vmem:[#allocation3] sm:$0xff] %v729_v30  ;;  %v669_v37 = vadd.f32 %v656_v35, %v568_v27  ;;  %v730_v38 = vadd.f32 %v717_v36, %v677_v28 }
 0x1ce   : > { %675 = vst [vmem:[#allocation2 + $0x18] sm:$0xff] %v671_v33  ;;  %736 = vst [vmem:[#allocation3 + $0x18] sm:$0xff] %v732_v34 }
 0x1cf   : > { %673 = vst [vmem:[#allocation2 + $0x8] sm:$0xff] %v669_v37  ;;  %734 = vst [vmem:[#allocation3 + $0x8] sm:$0xff] %v730_v38 }
 0x1d0 PF: > { %s2723_s22 = sld [smem:[#allocation27_spill]] }
 0x1d6   : > { %p1475_p0 = scmp.ne.s32.totalorder %s2723_s22, 1 }
 0x1d7   : > { %v743_v39 = vld [vmem:[%s2514_s21 + $0x10] sm:$0xff] (!%p1475_p0)  ;;  %v741_v40 = vld [vmem:[%s2514_s21] sm:$0xff] (!%p1475_p0)  ;;  %v2149_v41 = vmov (!%p1475_p0), 0   ;;  %v744_v42 = vld [vmem:[%s2514_s21 + $0x18] sm:$0xff] (!%p1475_p0)  ;;  %v2150_v48 = vmov (!%p1475_p0), 1   ;;  %vm1202_vm0 = vcmask (!%p1475_p0), 1040384  }
 0x1d8   : > { %740 = sbr.rel (%p1475_p0) target bundleno = 881 (0x371), region = 68  ;;  %1834 = vset.pattern.permute.xlu1 (!%p1475_p0), %v2149_v41  ;;  %1833 = vset.pattern.permute.xlu0 (!%p1475_p0), %v2149_v41  ;;  %v742_v43 = vld [vmem:[%s2514_s21 + $0x8] sm:$0xff] (!%p1475_p0)  ;;  %v1837_v44 = vld [vmem:[#allocation12] sm:$0xff] (!%p1475_p0)   ;;  %v1839_v46 = vld [vmem:[#allocation12 + $0x10] sm:$0xff] (!%p1475_p0)  }
 0x1d9   : > { %761 = vperm.xlu1 (!%p1475_p0), %1834, %v743_v39   ;;  %751 = vperm.xlu0 (!%p1475_p0), %1833, %v741_v40   ;;  %v1838_v45 = vld [vmem:[#allocation12 + $0x8] sm:$0xff] (!%p1475_p0)   ;;  %v1844_v47 = vld [vmem:[#allocation12 + $0x40] sm:$0xff] (!%p1475_p0)   ;;  %v1840_v49 = vld [vmem:[#allocation12 + $0x18] sm:$0xff] (!%p1475_p0)  }
 0x1da   : > { %1641 = vmatprep.subr.bf16.mxu0 (!%p1475_p0), %v1837_v44  ;;  %1621 = vmatprep.subr.bf16.mxu1 (!%p1475_p0), %v1844_v47  ;;  %v1846_v50 = vld [vmem:[#allocation12 + $0x48] sm:$0xff] (!%p1475_p0)   ;;  %v1841_v51 = vld [vmem:[#allocation12 + $0x20] sm:$0xff] (!%p1475_p0)   ;;  %v1848_v52 = vld [vmem:[#allocation12 + $0x50] sm:$0xff] (!%p1475_p0)  }
 0x1db   : > { %1642 = vmatpush3.bf16.msra.mxu0 (!%p1475_p0), %v1837_v44  ;;  %1622 = vmatpush3.bf16.msra.mxu1 (!%p1475_p0), %v1844_v47  ;;  %v1842_v53 = vld [vmem:[#allocation12 + $0x28] sm:$0xff] (!%p1475_p0)   ;;  %v1850_v54 = vld [vmem:[#allocation12 + $0x58] sm:$0xff] (!%p1475_p0)   ;;  %v1843_v55 = vld [vmem:[#allocation12 + $0x30] sm:$0xff] (!%p1475_p0)  }
 0x1dc   : > { %1643 = vmatprep.subr.bf16.mxu0 (!%p1475_p0), %v1838_v45  ;;  %1623 = vmatprep.subr.bf16.mxu1 (!%p1475_p0), %v1846_v50  ;;  %v1852_v56 = vld [vmem:[#allocation12 + $0x60] sm:$0xff] (!%p1475_p0)   ;;  %v1845_v57 = vld [vmem:[#allocation12 + $0x38] sm:$0xff] (!%p1475_p0)   ;;  %v1854_v58 = vld [vmem:[#allocation12 + $0x68] sm:$0xff] (!%p1475_p0)  }
 0x1dd   : > { %766 = vperm.xlu1 (!%p1475_p0), %1834, %v744_v42   ;;  %756 = vperm.xlu0 (!%p1475_p0), %1833, %v742_v43   ;;  %v1847_v59 = vld [vmem:[#allocation12 + $0x80] sm:$0xff] (!%p1475_p0)   ;;  %v1856_v60 = vld [vmem:[#allocation12 + $0x70] sm:$0xff] (!%p1475_p0)   ;;  %v1858_v61 = vld [vmem:[#allocation12 + $0x78] sm:$0xff] (!%p1475_p0)  }
 0x1de   : > { %v747_v0 = vld [vmem:[#allocation2 + $0x10] sm:$0xff] (!%p1475_p0)  ;;  %v745_v1 = vld [vmem:[#allocation2] sm:$0xff] (!%p1475_p0)  ;;  %v748_v2 = vld [vmem:[#allocation2 + $0x18] sm:$0xff] (!%p1475_p0) }
 0x1df   : > { %1644 = vmatpush3.bf16.msra.mxu0 %v1838_v45  ;;  %1624 = vmatpush3.bf16.msra.mxu1 %v1846_v50  ;;  %v746_v3 = vld [vmem:[#allocation2 + $0x8] sm:$0xff]  ;;  %v775_v13 = vld [vmem:[#allocation3] sm:$0xff]  ;;  %v777_v20 = vld [vmem:[#allocation3 + $0x10] sm:$0xff] }
 0x1e0   : > { %1645 = vmatprep.subr.bf16.mxu0 %v1839_v46  ;;  %1625 = vmatprep.subr.bf16.mxu1 %v1848_v52  ;;  %v776_v12 = vld [vmem:[#allocation3 + $0x8] sm:$0xff]  ;;  %v1861_v14 = vld [vmem:[%s2477_s4] sm:$0xff]   ;;  %v778_v21 = vld [vmem:[#allocation3 + $0x18] sm:$0xff] }
 0x1e1   : > { %1836 = vset.pattern.permute.xlu1 %v2150_v48  ;;  %1835 = vset.pattern.permute.xlu0 %v2150_v48  ;;  %v1849_v15 = vld [vmem:[#allocation12 + $0x88] sm:$0xff]   ;;  %v1851_v22 = vld [vmem:[#allocation12 + $0x90] sm:$0xff]   ;;  %v1853_v28 = vld [vmem:[#allocation12 + $0x98] sm:$0xff]  }
 0x1e2   : > { %784 = vperm.xlu1 %1836, %v742_v43   ;;  %780 = vperm.xlu0 %1835, %v741_v40   ;;  %v1855_v30 = vld [vmem:[#allocation12 + $0xa0] sm:$0xff]   ;;  %v1857_v31 = vld [vmem:[#allocation12 + $0xa8] sm:$0xff]   ;;  %v1859_v32 = vld [vmem:[#allocation12 + $0xb0] sm:$0xff]  }
 0x1e3   : > { %1646 = vmatpush3.bf16.msra.mxu0 %v1839_v46  ;;  %1626 = vmatpush3.bf16.msra.mxu1 %v1848_v52  ;;  %v1860_v33 = vld [vmem:[#allocation12 + $0xb8] sm:$0xff]  }
 0x1e4   : > { %1647 = vmatprep.subr.bf16.mxu0 %v1840_v49  ;;  %1627 = vmatprep.subr.bf16.mxu1 %v1850_v54  ;;  %v1862_v34 = vld [vmem:[%s2477_s4 + $0x8] sm:$0xff]  }
 0x1e6   : > { %788 = vperm.xlu1 %1836, %v743_v39   ;;  %792 = vperm.xlu0 %1835, %v744_v42  }
 0x1e7   : > { %1648 = vmatpush3.bf16.msra.mxu0 %v1840_v49  ;;  %1628 = vmatpush3.bf16.msra.mxu1 %v1850_v54 }
 0x1e8   : > { %1649 = vmatprep.subr.bf16.mxu0 %v1841_v51  ;;  %1629 = vmatprep.subr.bf16.mxu1 %v1852_v56 }
 0x1eb   : > { %1650 = vmatpush3.bf16.msra.mxu0 %v1841_v51  ;;  %1630 = vmatpush3.bf16.msra.mxu1 %v1852_v56 }
 0x1ec   : > { %1651 = vmatprep.subr.bf16.mxu0 %v1842_v53  ;;  %1631 = vmatprep.subr.bf16.mxu1 %v1854_v58 }
 0x1ef   : > { %1652 = vmatpush3.bf16.msra.mxu0 %v1842_v53  ;;  %1632 = vmatpush3.bf16.msra.mxu1 %v1854_v58 }
 0x1f0   : > { %1653 = vmatprep.subr.bf16.mxu0 %v1843_v55  ;;  %1633 = vmatprep.subr.bf16.mxu1 %v1856_v60 }
 0x1f3   : > { %1654 = vmatpush3.bf16.msra.mxu0 %v1843_v55  ;;  %1634 = vmatpush3.bf16.msra.mxu1 %v1856_v60 }
 0x1f4   : > { %1655 = vmatprep.subr.bf16.mxu0 %v1845_v57  ;;  %1635 = vmatprep.subr.bf16.mxu1 %v1858_v61 }
 0x1f7   : > { %1656 = vmatpush3.bf16.msra.mxu0 %v1845_v57  ;;  %1636 = vmatpush3.bf16.msra.mxu1 %v1858_v61 }
 0x1f8   : > { %1661 = vmatprep.subr.bf16.mxu0 %v1847_v59 }
 0x258   : > { %v762_v62 = vpop.permute.xlu1 %761  ;;  %v752_v63 = vpop.permute.xlu0 %751 }
 0x259   : > { %v771_v6 = vmul.f32 %v762_v62, %v747_v0  ;;  %v769_v7 = vmul.f32 %v752_v63, %v745_v1 }
 0x25c   : > { %v767_v4 = vpop.permute.xlu1 %766  ;;  %v757_v5 = vpop.permute.xlu0 %756 }
 0x25d   : > { %v772_v8 = vmul.f32 %v767_v4, %v748_v2  ;;  %v770_v9 = vmul.f32 %v757_v5, %v746_v3 }
 0x25f   : > { %v774_v10 = vpack.c.bf16 %v772_v8, %v771_v6  ;;  %v773_v11 = vpack.c.bf16 %v770_v9, %v769_v7 }
 0x261   : > { %1657 = vmatprep.mubr.bf16.mxu0 %v773_v11  ;;  %v785_v16 = vpop.permute.xlu1 %784  ;;  %v781_v17 = vpop.permute.xlu0 %780 }
 0x262   : > { %1658 = vmatmul.mubr.bf16.vlgmr.msra.gmra.mrb[0].mxu0 %v774_v10  ;;  %v796_v18 = vmul.f32 %v785_v16, %v776_v12  ;;  %v795_v19 = vmul.f32 %v781_v17, %v775_v13 }
 0x263   : > { %1662 = vmatpush3.bf16.msra.mxu0 %v1847_v59  ;;  %1677 = vmatprep.mubr.bf16.mxu0 %v1861_v14 }
 0x264   : > { %1663 = vmatprep.subr.bf16.mxu0 %v1849_v15  ;;  %v799_v23 = vpack.c.bf16 %v796_v18, %v795_v19 }
 0x265   : > { %v789_v24 = vpop.permute.xlu1 %788  ;;  %v793_v25 = vpop.permute.xlu0 %792 }
 0x266   : > { %v797_v26 = vmul.f32 %v789_v24, %v777_v20  ;;  %v798_v27 = vmul.f32 %v793_v25, %v778_v21  ;;  %1637 = vmatprep.mubr.bf16.mxu1 %v799_v23 }
 0x267   : > { %1664 = vmatpush3.bf16.msra.mxu0 %v1849_v15 }
 0x268   : > { %1665 = vmatprep.subr.bf16.mxu0 %v1851_v22  ;;  %v800_v29 = vpack.c.bf16 %v798_v27, %v797_v26 }
 0x26a   : > { %1638 = vmatmul.mubr.bf16.vlgmr.msra.gmra.mrb[0].mxu1 %v800_v29 }
 0x26b   : > { %1666 = vmatpush3.bf16.msra.mxu0 %v1851_v22 }
 0x26c   : > { %1667 = vmatprep.subr.bf16.mxu0 %v1853_v28 }
 0x26f   : > { %1668 = vmatpush3.bf16.msra.mxu0 %v1853_v28 }
 0x270   : > { %1669 = vmatprep.subr.bf16.mxu0 %v1855_v30 }
 0x273   : > { %1670 = vmatpush3.bf16.msra.mxu0 %v1855_v30 }
 0x274   : > { %1671 = vmatprep.subr.bf16.mxu0 %v1857_v31 }
 0x277   : > { %1672 = vmatpush3.bf16.msra.mxu0 %v1857_v31 }
 0x278   : > { %1673 = vmatprep.subr.bf16.mxu0 %v1859_v32 }
 0x27b   : > { %1674 = vmatpush3.bf16.msra.mxu0 %v1859_v32 }
 0x27c   : > { %1675 = vmatprep.subr.bf16.mxu0 %v1860_v33 }
 0x27f   : > { %1676 = vmatpush3.bf16.msra.mxu0 %v1860_v33 }
 0x282   : > { %1678 = vmatmul.mubr.bf16.vlgmr.msra.gmra.mrb[0].mxu0 %v1862_v34 }
 0x33d   : > { %v1639_v35 = vpop.f32.mrb[0].mxu1 }
 0x33e   : > { %v915_v36 = vpop.f32.mrb[1].mxu1 }
 0x33f   : > { %v1640_v37 = vpop.f32.mrb[2].mxu1 }
 0x340   : > { %v918_v38 = vpop.f32.mrb[3].mxu1 }
 0x355   : > { %v1679_v39 = vpop.f32.mrb[0].mxu0 }
 0x356   : > { %v1681_v40 = vadd.f32 %v1679_v39, %v1639_v35  ;;  %v1141_v41 = vpop.f32.mrb[1].mxu0 }
 0x357   : > { %v1682_v42 = vadd.f32 %v1141_v41, %v915_v36  ;;  %v1680_v43 = vpop.f32.mrb[2].mxu0 }
 0x358   : > { %v1683_v44 = vadd.f32 %v1680_v43, %v1640_v37  ;;  %v1144_v45 = vpop.f32.mrb[3].mxu0  ;;  %v1191_v52 = vmul.f32 %v1681_v40, %v1681_v40 }
 0x359   : > { %v1684_v46 = vadd.f32 %v1144_v45, %v918_v38  ;;  %v1189_v48 = vmul.f32 %v1682_v42, %v1682_v42 }
 0x35a   : > { %v1528_v47 = vpack.c.bf16 %v1683_v44, %v1681_v40  ;;  %v1192_v55 = vmul.f32 %v1683_v44, %v1683_v44 }
 0x35b   : > { %v1523_v49 = vpack.c.bf16 %v1684_v46, %v1682_v42  ;;  %v1180_v50 = vadd.f32 %v1684_v46, %v1682_v42  ;;  %v1190_v51 = vmul.f32 %v1684_v46, %v1684_v46 }
 0x35c   : > { %1530 = vst [vmem:[%s2518_s20 + $0x8] sm:$0xff] %v1528_v47  }
 0x35d   : > { %1524 = vst [vmem:[%s2518_s20] sm:$0xff] %v1523_v49   ;;  %v1181_v53 = vadd.f32 %v1681_v40, %v1180_v50  ;;  %v1193_v54 = vadd.f32 %v1190_v51, %v1189_v48 }
 0x35f   : > { %v1182_v56 = vadd.f32 %v1683_v44, %v1181_v53  ;;  %v1194_v57 = vadd.f32 %v1193_v54, %v1191_v52 }
 0x361   : > { %v1183_v58 = vrot.slane %v1182_v56, 4  ;;  %v1195_v59 = vadd.f32 %v1194_v57, %v1192_v55 }
 0x363   : > { %v1184_v60 = vadd.f32 %v1183_v58, %v1182_v56  ;;  %v1196_v61 = vrot.slane %v1195_v59, 4 }
 0x365   : > { %v1185_v62 = vrot.slane %v1184_v60, 2  ;;  %v1197_v63 = vadd.f32 %v1196_v61, %v1195_v59 }
 0x367   : > { %v1186_v0 = vadd.f32 %v1185_v62, %v1184_v60  ;;  %v1198_v1 = vrot.slane %v1197_v63, 2 }
 0x369   : > { %v1187_v2 = vrot.slane %v1186_v0, 1  ;;  %v1199_v3 = vadd.f32 %v1198_v1, %v1197_v63 }
 0x36b   : > { %v1200_v4 = vrot.slane %v1199_v3, 1  ;;  %v1188_v5 = vadd.f32 %v1187_v2, %v1186_v0 }
 0x36d   : > { %v1201_v6 = vadd.f32 %v1200_v4, %v1199_v3 }
 0x36f   : > { %v1203_v7 = vsel %vm1202_vm0, %v1188_v5, %v1201_v6 }
 0x370   : > { %1204 = vst [vmem:[%s2520_s7] sm:$0x3] %v1203_v7 }
 0x371 PF: > { %s1519_s25 = sshll.u32 %s2127_s24, 8  ;;  %s2725_s4 = sld [smem:[#allocation41_spill]] }
 0x372   : > { %s1224_s30 = sshll.u32 %s2518_s20, 4  ;;  %s1206_s10 = scalar_lea.sflag [#allocation9], %s2471_s0  ;;  %s2552_s30 = int_to_ptr.vmem [resolvable:$true] %s1224_s30 }
 0x373   : > { %s1975_s13 = scalar_lea.vmem %s2552_s30, 256  ;;  %s2151_s28 = smov [#allocation13]  }
 0x374   : > { %p1976_p8 = scmp.ne.s32.totalorder %s2552_s30, %s1975_s13  ;;  %s1979_s11 = sshll.u32 %s2151_s28, 4  ;;  %s1980_s11 = int_to_ptr.vmem [resolvable:$false] %s1979_s11 }
 0x375   : > { %s1981_s17 = scalar_lea.vmem %s1980_s11, 512  ;;  %p1982_p12 = scmp.lt.s32.totalorder %s2552_s30, %s1980_s11 }
 0x376   : > { %p1977_p5 = pnand %p1976_p8, %p2333_p4  ;;  %p1983_p3 = scmp.lt.s32.totalorder %s1981_s17, %s1975_s13 }
 0x377   : > { %s2549_s14 = scalar_lea.hbm %s2725_s4, %s1519_s25 }
 0x378   : > { %p1978_p13 = pneg %p1977_p5  ;;  %p1984_p7 = por %p1983_p3, %p1982_p12 }
 0x37a   : > { %p1985_p6 = pnand %p1984_p7, %p1978_p13 }
 0x37c   : > { %1988 = shalt.err (!%p1985_p6)
}
 0x37d   : > { %s1989_s5 = scalar_lea.hbm %s2549_s14, 256  ;;  %s1993_s3 = scalar_lea.hbm %s2725_s4, 768 }
 0x37e   : > { %p1990_p9 = scmp.ne.s32.totalorder %s2549_s14, %s1989_s5  ;;  %p1994_p11 = scmp.lt.u32.totalorder %s2549_s14, %s2725_s4 }
 0x37f   : > { %p1995_p2 = scmp.lt.u32.totalorder %s1993_s3, %s1989_s5  ;;  %p1997_p8 = scmp.lt.u32.totalorder %s1989_s5, %s2549_s14 }
 0x380   : > { %p1991_p10 = pnand %p1990_p9, %p2333_p4 }
 0x381   : > { %p1996_p0 = por %p1995_p2, %p1994_p11 }
 0x382   : > { %p1992_p1 = pneg %p1991_p10 }
 0x383   : > { %p1998_p5 = por %p1997_p8, %p1996_p0 }
 0x385   : > { %p1999_p13 = pnand %p1998_p5, %p1992_p1 }
 0x387   : > { %2002 = shalt.err (!%p1999_p13)
}
 0x388   : > { %s2152_s2 = smov 64   ;;  %s2153_s23 = smov 4  }
 0x389   : > { %1699 = dma.vmem_to_hbm [thread:$0]  (%p2333_p4), %s2552_s30, 256, %s2549_s14, %s1206_s10, %s2152_s2, %s2152_s2, %s2153_s23  }
 0x38a   : > { %s1510_s20 = sshll.u32 %s2127_s24, 5  ;;  %s1240_s6 = sshll.u32 %s2520_s7, 4  ;;  %s1241_s6 = int_to_ptr.vmem [resolvable:$true] %s1240_s6 }
 0x38b   : > { %s2726_s25 = sld [smem:[#allocation42_spill]]  ;;  %s1211_s13 = scalar_lea.sflag [#allocation15], %s2471_s0 }
 0x38c   : > { %s2003_s28 = scalar_lea.vmem %s1241_s6, 32  ;;  %s2154_s11 = smov [#allocation14]  }
 0x38d   : > { %p2004_p12 = scmp.ne.s32.totalorder %s1241_s6, %s2003_s28  ;;  %s2007_s17 = sshll.u32 %s2154_s11, 4  ;;  %s2008_s17 = int_to_ptr.vmem [resolvable:$false] %s2007_s17 }
 0x38e   : > { %s2009_s5 = scalar_lea.vmem %s2008_s17, 64  ;;  %p2010_p6 = scmp.lt.s32.totalorder %s1241_s6, %s2008_s17 }
 0x38f   : > { %p2005_p3 = pnand %p2004_p12, %p2333_p4  ;;  %p2011_p9 = scmp.lt.s32.totalorder %s2009_s5, %s2003_s28 }
 0x391   : > { %s2727_s29 = smov %s2726_s25  ;;  %s2583_s26 = scalar_lea.hbm %s2726_s25, %s1510_s20 }
 0x392   : > { %p2006_p7 = pneg %p2005_p3  ;;  %p2012_p10 = por %p2011_p9, %p2010_p6 }
 0x394   : > { %p2013_p1 = pnand %p2012_p10, %p2006_p7 }
 0x396   : > { %2016 = shalt.err (!%p2013_p1)
}
 0x397   : > { %s2017_s24 = scalar_lea.hbm %s2583_s26, 32  ;;  %s2021_s14 = scalar_lea.hbm %s2727_s29, 96 }
 0x398   : > { %p2018_p11 = scmp.ne.s32.totalorder %s2583_s26, %s2017_s24  ;;  %p2022_p8 = scmp.lt.u32.totalorder %s2583_s26, %s2727_s29 }
 0x399   : > { %p2023_p5 = scmp.lt.u32.totalorder %s2021_s14, %s2017_s24  ;;  %p2025_p12 = scmp.lt.u32.totalorder %s2017_s24, %s2583_s26 }
 0x39a   : > { %p2019_p2 = pnand %p2018_p11, %p2333_p4 }
 0x39b   : > { %p2024_p13 = por %p2023_p5, %p2022_p8 }
 0x39c   : > { %p2020_p0 = pneg %p2019_p2 }
 0x39d   : > { %p2026_p3 = por %p2025_p12, %p2024_p13 }
 0x39f   : > { %p2027_p7 = pnand %p2026_p3, %p2020_p0 }
 0x3a1   : > { %2030 = shalt.err (!%p2027_p7)
}
 0x3a2   : > { %1700 = dma.vmem_to_hbm [thread:$0]  (%p2333_p4), %s1241_s6, 32, %s2583_s26, %s1211_s13  }
 0x3a3 PF: > { %s2728_s12 = sld [smem:[#allocation24_spill]]  ;;  %s2729_s1 = sld [smem:[#allocation30_spill]] }
 0x3a4   : > { %p1726_p6 = scmp.ge.s32.totalorder %s2139_s27, 2 }
 0x3a9   : > { %s1252_s3 = sand.u32 1, %s2728_s12   ;;  %p2730_p9 = scmp.ne.s32.totalorder %s2729_s1, 0 }
 0x3aa   : > { %s1253_s16 = scalar_lea.sflag [#allocation9], %s1252_s3 }
 0x3ab   : > { %p1717_p10 = pnand %p1726_p6, %p2730_p9 }
 0x3ad   : > { %2090 = dma.done.wait (!%p1717_p10), %s1253_s16, 256  }
 0x3ae   : > { %2092 = vsyncadd (!%p1717_p10), %s1253_s16, 4294967040  ;;  %s1262_s8 = scalar_lea.sflag [#allocation15], %s1252_s3 }
 0x3af   : > { %2094 = dma.done.wait (!%p1717_p10), %s1262_s8, 32  }
 0x3b0   : > { %2096 = vsyncadd (!%p1717_p10), %s1262_s8, 4294967264  ;;  %s42_s27 = sadd.s32 1, %s2139_s27   ;;  %s2731_s20 = sld [smem:[#allocation25_spill]] }
 0x3b1   : > { %p39_p1 = scmp.ge.s32.totalorder %s42_s27, 8   ;;  %s2732_s21 = sld [smem:[#allocation26_spill]] }
 0x3b2   : > { %s2733_s22 = sld [smem:[#allocation34_spill]]  ;;  %s2734_s23 = sld [smem:[#allocation28_spill]] }
 0x3b3   : > { %s2735_s24 = sld [smem:[#allocation29_spill]]  ;;  %s2736_s25 = sld [smem:[#allocation31_spill]] }
 0x3b4   : > { %s2737_s26 = sld [smem:[#allocation33_spill]]  ;;  %s2738_s1 = smov %s2103_s18 }
 0x3b5   : > { %s2739_s18 = smov %s2107_s19  ;;  %s2740_s19 = smov %s2417_s15 }
 0x3b6   :  { %41 = sbr.rel (!%p39_p1) target bundleno = 41 (0x29), region = 144 }
 0x3bd   :  { %1267 = vsyncpa [#allocation8], 1 }
 0x3be   :  { %1269 = vsyncpa [#allocation8 + $0x1], 1 }
 0x3bf   :  { %1270 = vsyncpa [#allocation11], 1 }
 0x3c0   :  { %1272 = vsyncpa [#allocation11 + $0x1], 1 }
 0x3c1   :  { %1273 = vsyncpa [#allocation9], 1 }
 0x3c2   :  { %1275 = vsyncpa [#allocation9 + $0x1], 1 }
 0x3c3   :  { %1276 = vsyncpa [#allocation15], 1 }
 0x3c4   :  { %1278 = vsyncpa [#allocation15 + $0x1], 1 }

</bundles_post_ra>
